<compile_context>
chip_gen: v5e
topology: v5e:2x2
jax: 0.10.0
libtpu: 0.0.40
codegen_flags: <defaults>
</compile_context>

<pallas_src>
import jax
import jax.numpy as jnp
from jax.experimental import pallas as pl
from jax.experimental.pallas import tpu as pltpu

_MAX_TILE = 8192  # batch-tile upper bound (v7x-safe; ~0.3 MiB of VMEM per buffered tile)


def _round_up(n, m):
    return ((n + m - 1) // m) * m


def _hook_kernel(params_ref, x_ref, out_ref):
    # params_ref: f32[9] in SMEM, laid out as
    #   [w1_00, w1_01, w1_10, w1_11, b1_0, b1_1, w2_00, w2_01, b2_0]
    # x_ref:   [2, TB]  (lane-major batch)
    # out_ref: [8, TB]  rows 0..4 = lin1_0, lin1_1, lin2, relu, relu6; rows 5..7 pad
    x0 = x_ref[0:1, :]  # [1, TB]
    x1 = x_ref[1:2, :]  # [1, TB]

    w1_00 = params_ref[0]
    w1_01 = params_ref[1]
    w1_10 = params_ref[2]
    w1_11 = params_ref[3]
    b1_0 = params_ref[4]
    b1_1 = params_ref[5]
    w2_00 = params_ref[6]
    w2_01 = params_ref[7]
    b2_0 = params_ref[8]

    # linear_1: y = x @ W1.T + b1, as lane-dense VPU broadcast multiply-adds.
    lin1_0 = x0 * w1_00 + x1 * w1_01 + b1_0          # [1, TB]
    lin1_1 = x0 * w1_10 + x1 * w1_11 + b1_1          # [1, TB]
    # linear_2: y = lin1 @ W2.T + b2
    lin2 = lin1_0 * w2_00 + lin1_1 * w2_01 + b2_0    # [1, TB]
    relu = jnp.maximum(lin2, 0.0)
    relu6 = jnp.minimum(relu, 6.0)

    pad = jnp.zeros((3, lin2.shape[1]), dtype=lin2.dtype)
    out_ref[...] = jnp.concatenate([lin1_0, lin1_1, lin2, relu, relu6, pad], axis=0)


def test_for_hook_forward(x, w1, b1, w2, b2):
    """Pallas equivalent of TestForHook.forward.

    Returns (relu_6, layers_in, layers_out) exactly like the PyTorch module:
      layers_in  = (x, linear_1, linear_2)
      layers_out = (linear_1, linear_2, relu)
    """
    x = x.astype(jnp.float32)
    B = x.shape[0]

    # Pack the 9 parameter scalars into one SMEM-resident vector (scalar prefetch).
    params = jnp.concatenate(
        [w1.reshape(-1), b1.reshape(-1), w2.reshape(-1), b2.reshape(-1)]
    ).astype(jnp.float32)

    # Batch tile: multiple of 128 lanes, capped so VMEM stays tiny even on v7x.
    tb = min(_MAX_TILE, _round_up(max(B, 1), 128))
    b_pad = _round_up(B, tb)
    n_tiles = b_pad // tb

    # Lane-major layout: [2, B_pad], zero-padded tail (padded columns are sliced off).
    x_t = jnp.pad(x.T, ((0, 0), (0, b_pad - B)))

    packed = pl.pallas_call(
        _hook_kernel,
        out_shape=jax.ShapeDtypeStruct((8, b_pad), jnp.float32),
        grid_spec=pltpu.PrefetchScalarGridSpec(
            num_scalar_prefetch=1,
            grid=(n_tiles,),
            in_specs=[pl.BlockSpec((2, tb), lambda i, params_ref: (0, i))],
            out_specs=pl.BlockSpec((8, tb), lambda i, params_ref: (0, i)),
        ),
        compiler_params=pltpu.CompilerParams(
            dimension_semantics=("parallel",),        # shard batch tiles across TCs (v7x)
            vmem_limit_bytes=32 * 1024 * 1024,
        ),
        cost_estimate=pl.CostEstimate(
            flops=9 * b_pad,
            transcendentals=0,
            bytes_accessed=(2 * b_pad + 8 * b_pad + 9) * 4,
        ),
    )(params, x_t)

    lin1 = packed[0:2, :B].T   # [B, 2]
    lin2 = packed[2:3, :B].T   # [B, 1]
    relu = packed[3:4, :B].T   # [B, 1]
    relu6 = packed[4:5, :B].T  # [B, 1]

    layers_in = (x, lin1, lin2)
    layers_out = (lin1, lin2, relu)
    return relu6, layers_in, layers_out


if __name__ == "__main__":
    # Deterministic parameters exactly as in TestForHook.initialize()
    w1 = jnp.array([[1.0, 1.0], [1.0, 1.0]], dtype=jnp.float32)   # linear_1.weight [out=2, in=2]
    b1 = jnp.array([1.0, 1.0], dtype=jnp.float32)                 # linear_1.bias   [2]
    w2 = jnp.array([[1.0, 1.0]], dtype=jnp.float32)               # linear_2.weight [out=1, in=2]
    b2 = jnp.array([1.0], dtype=jnp.float32)                      # linear_2.bias   [1]

    # Input from the reference script: fixed 2x2 of 0.1 (PRNG key kept only for the
    # deterministic-construction convention).
    key = jax.random.PRNGKey(0)
    del key
    x = jnp.full((2, 2), 0.1, dtype=jnp.float32)

    relu6, layers_in, layers_out = test_for_hook_forward(x, w1, b1, w2, b2)
    jax.block_until_ready(relu6)
    jax.block_until_ready(layers_in)
    jax.block_until_ready(layers_out)

    # Reference check against plain JAX math (PyTorch Linear: y = x @ W.T + b)
    lin1_ref = x @ w1.T + b1
    lin2_ref = lin1_ref @ w2.T + b2
    relu_ref = jnp.maximum(lin2_ref, 0.0)
    relu6_ref = jnp.minimum(relu_ref, 6.0)

    assert jnp.allclose(layers_out[0], lin1_ref, atol=1e-6)
    assert jnp.allclose(layers_out[1], lin2_ref, atol=1e-6)
    assert jnp.allclose(layers_out[2], relu_ref, atol=1e-6)
    assert jnp.allclose(relu6, relu6_ref, atol=1e-6)
    assert jnp.allclose(layers_in[0], x, atol=1e-6)
    assert jnp.allclose(layers_in[1], lin1_ref, atol=1e-6)
    assert jnp.allclose(layers_in[2], lin2_ref, atol=1e-6)

    # Larger ragged batch to exercise the grid / padding path.
    xb = jax.random.normal(jax.random.PRNGKey(0), (300, 2), dtype=jnp.float32)
    r6b, _, lob = test_for_hook_forward(xb, w1, b1, w2, b2)
    jax.block_until_ready(r6b)
    lin1b = xb @ w1.T + b1
    lin2b = lin1b @ w2.T + b2
    assert jnp.allclose(lob[0], lin1b, atol=1e-5)
    assert jnp.allclose(r6b, jnp.minimum(jnp.maximum(lin2b, 0.0), 6.0), atol=1e-5)

    print("KERNEL_OK")
</pallas_src>

<mosaic_0001>
module attributes {stable_mosaic.version = 11 : i64} {
  func.func @_hook_kernel(%arg0: i32, %arg1: memref<9xf32, #tpu.memory_space<smem>>, %arg2: memref<2x128xf32, #tpu.memory_space<vmem>>, %arg3: memref<8x128xf32, #tpu.memory_space<vmem>>) attributes {dimension_semantics = [#tpu.dimension_semantics<parallel>], iteration_bounds = array<i64: 1>, scalar_prefetch = 1 : i64, scratch_operands = 0 : i64, tpu.core_type = #tpu.core_type<tc>, window_params = [{transform_indices = @transform_0, window_bounds = array<i64: 2, 128>}, {transform_indices = @transform_1, window_bounds = array<i64: 8, 128>}]} {
    %c0 = arith.constant 0 : index
    %c0_0 = arith.constant 0 : index
    %0 = vector.load %arg2[%c0, %c0_0] : memref<2x128xf32, #tpu.memory_space<vmem>>, vector<1x128xf32>
    %c1 = arith.constant 1 : index
    %c0_1 = arith.constant 0 : index
    %1 = vector.load %arg2[%c1, %c0_1] : memref<2x128xf32, #tpu.memory_space<vmem>>, vector<1x128xf32>
    %c0_2 = arith.constant 0 : index
    %2 = memref.load %arg1[%c0_2] : memref<9xf32, #tpu.memory_space<smem>>
    %c1_3 = arith.constant 1 : index
    %3 = memref.load %arg1[%c1_3] : memref<9xf32, #tpu.memory_space<smem>>
    %c2 = arith.constant 2 : index
    %4 = memref.load %arg1[%c2] : memref<9xf32, #tpu.memory_space<smem>>
    %c3 = arith.constant 3 : index
    %5 = memref.load %arg1[%c3] : memref<9xf32, #tpu.memory_space<smem>>
    %c4 = arith.constant 4 : index
    %6 = memref.load %arg1[%c4] : memref<9xf32, #tpu.memory_space<smem>>
    %c5 = arith.constant 5 : index
    %7 = memref.load %arg1[%c5] : memref<9xf32, #tpu.memory_space<smem>>
    %c6 = arith.constant 6 : index
    %8 = memref.load %arg1[%c6] : memref<9xf32, #tpu.memory_space<smem>>
    %c7 = arith.constant 7 : index
    %9 = memref.load %arg1[%c7] : memref<9xf32, #tpu.memory_space<smem>>
    %c8 = arith.constant 8 : index
    %10 = memref.load %arg1[%c8] : memref<9xf32, #tpu.memory_space<smem>>
    %11 = vector.broadcast %2 : f32 to vector<1x128xf32>
    %12 = arith.mulf %0, %11 : vector<1x128xf32>
    %13 = vector.broadcast %3 : f32 to vector<1x128xf32>
    %14 = arith.mulf %1, %13 : vector<1x128xf32>
    %15 = arith.addf %12, %14 : vector<1x128xf32>
    %16 = vector.broadcast %6 : f32 to vector<1x128xf32>
    %17 = arith.addf %15, %16 : vector<1x128xf32>
    %18 = vector.broadcast %4 : f32 to vector<1x128xf32>
    %19 = arith.mulf %0, %18 : vector<1x128xf32>
    %20 = vector.broadcast %5 : f32 to vector<1x128xf32>
    %21 = arith.mulf %1, %20 : vector<1x128xf32>
    %22 = arith.addf %19, %21 : vector<1x128xf32>
    %23 = vector.broadcast %7 : f32 to vector<1x128xf32>
    %24 = arith.addf %22, %23 : vector<1x128xf32>
    %25 = vector.broadcast %8 : f32 to vector<1x128xf32>
    %26 = arith.mulf %17, %25 : vector<1x128xf32>
    %27 = vector.broadcast %9 : f32 to vector<1x128xf32>
    %28 = arith.mulf %24, %27 : vector<1x128xf32>
    %29 = arith.addf %26, %28 : vector<1x128xf32>
    %30 = vector.broadcast %10 : f32 to vector<1x128xf32>
    %31 = arith.addf %29, %30 : vector<1x128xf32>
    %cst = arith.constant 0.000000e+00 : f32
    %32 = vector.broadcast %cst : f32 to vector<1x128xf32>
    %33 = arith.maximumf %31, %32 : vector<1x128xf32>
    %cst_4 = arith.constant 6.000000e+00 : f32
    %34 = vector.broadcast %cst_4 : f32 to vector<1x128xf32>
    %35 = arith.minimumf %33, %34 : vector<1x128xf32>
    %cst_5 = arith.constant 0.000000e+00 : f32
    %36 = vector.broadcast %cst_5 : f32 to vector<3x128xf32>
    %37 = tpu.concatenate %17, %24, %31, %33, %35, %36 in 0 : vector<1x128xf32>, vector<1x128xf32>, vector<1x128xf32>, vector<1x128xf32>, vector<1x128xf32>, vector<3x128xf32> -> vector<8x128xf32>
    %c0_6 = arith.constant 0 : index
    %c0_7 = arith.constant 0 : index
    %38 = vector.load %arg3[%c0_6, %c0_7] : memref<8x128xf32, #tpu.memory_space<vmem>>, vector<8x128xf32>
    tpu.vector_store %arg3[%c0_6, %c0_7], %37 {strides = array<i32>} : memref<8x128xf32, #tpu.memory_space<vmem>>, vector<8x128xf32>,
    return
  }
  func.func @transform_0(%arg0: i32, %arg1: memref<9xf32, #tpu.memory_space<smem>>) -> (i32, i32) {
    %c0_i32 = arith.constant 0 : i32
    %c0_i32_0 = arith.constant 0 : i32
    return %c0_i32, %arg0 : i32, i32
  }
  func.func @transform_1(%arg0: i32, %arg1: memref<9xf32, #tpu.memory_space<smem>>) -> (i32, i32) {
    %c0_i32 = arith.constant 0 : i32
    %c0_i32_0 = arith.constant 0 : i32
    return %c0_i32, %arg0 : i32, i32
  }
}

</mosaic_0001>

<bundles_post_ra>
// kernel: tpu_custom_call.1
= control target key start
LH: loop header
LB: loop body
LE: loop exit
PB: predicated region body
PF: predicated region fallthrough
CT: control target
= control target key end

     0   :  { %s183_s12 = smov [#allocation3]   ;;  %s210_s0 = inlined_call_operand.hbm [shape: f32[9], index: 0, kind: input, shape index: {}]   ;;  %s211_s1 = inlined_call_operand.hbm [shape: f32[2,128], index: 1, kind: input, shape index: {}]   ;;  %s212_s2 = inlined_call_operand.hbm [shape: f32[8,128], index: 2, kind: output, shape index: {}]  }
   0x1   :  { %s8_s11 = sshll.u32 %s210_s0, 4  ;;  %s9_s11 = int_to_ptr.hbm [resolvable:$true] %s8_s11 }
   0x2   :  { %11 = dma.hbm_to_smem %s9_s11, 16, %s183_s12, [#allocation2] }
   0x3   :  { %177 = dma.done.wait [#allocation2], 16 }
   0x4   :  { %178 = vsyncadd [#allocation2], 4294967280 }
   0x5   :  { %14 = sfence }
   0x6   :  { %15 = vsyncpa [#allocation5], 0 }
   0x7   :  { %16 = vsyncpa [#allocation6], 0  ;;  %s22_s15 = sshll.u32 %s211_s1, 4  ;;  %s184_s16 = smov [#allocation4]   ;;  %s23_s15 = int_to_ptr.hbm [resolvable:$true] %s22_s15 }
   0x8   :  { %s24_s17 = sshll.u32 %s184_s16, 4  ;;  %s25_s17 = int_to_ptr.vmem [resolvable:$true] %s24_s17 }
   0x9   :  { %27 = dma.hbm_to_vmem [thread:$0]  %s23_s15, 32, %s25_s17, [#allocation5]  }
   0xa   :  { %179 = dma.done.wait [#allocation5], 32  }
   0xb   :  { %180 = vsyncadd [#allocation5], 4294967264  ;;  %s34_s0 = sld [smem:[#allocation3]]  ;;  %v32_v0 = vld [vmem:[#allocation4] sm:$0x1]  ;;  %vm78_vm0 = vcmask 1040384  }
   0xc   :  { %s106_s18 = sld [smem:[#allocation3 + $0x1]]  ;;  %v33_v1 = vld [vmem:[#allocation4 + $0x1] sm:$0x1]  ;;  %vm80_vm1 = vcmask 1041408   ;;  %vm82_vm2 = vcmask 1042432   ;;  %vm84_vm3 = vcmask 1043456  }
   0xd   :  { %s107_s19 = sld [smem:[#allocation3 + $0x2]]  ;;  %s185_s25 = smov [#allocation7]   ;;  %vm86_vm4 = vcmask 1044480  }
   0xe   :  { %s108_s20 = sld [smem:[#allocation3 + $0x3]]  ;;  %s94_s26 = sshll.u32 %s185_s25, 4  ;;  %s95_s26 = int_to_ptr.vmem [resolvable:$true] %s94_s26 }
   0xf   :  { %s109_s21 = sld [smem:[#allocation3 + $0x4]]  ;;  %s96_s29 = sshll.u32 %s212_s2, 4  ;;  %s97_s29 = int_to_ptr.hbm [resolvable:$true] %s96_s29 }
  0x10   :  { %s110_s22 = sld [smem:[#allocation3 + $0x5]] }
  0x11   :  { %s111_s23 = sld [smem:[#allocation3 + $0x6]]  ;;  %v43_v2 = vstv %s34_s0 }
  0x12   :  { %s112_s24 = sld [smem:[#allocation3 + $0x7]]  ;;  %v44_v3 = vmul.f32 %v43_v2, %v32_v0  ;;  %v45_v4 = vstv %s106_s18 }
  0x13   :  { %v46_v5 = vmul.f32 %v45_v4, %v33_v1  ;;  %v50_v6 = vstv %s107_s19  ;;  %s113_s1 = sld [smem:[#allocation3 + $0x8]] }
  0x14   :  { %v51_v7 = vmul.f32 %v50_v6, %v32_v0  ;;  %v52_v8 = vstv %s108_s20 }
  0x15   :  { %v47_v9 = vadd.f32 %v46_v5, %v44_v3  ;;  %v48_v10 = vstv %s109_s21  ;;  %v53_v11 = vmul.f32 %v52_v8, %v33_v1 }
  0x16   :  { %v55_v12 = vstv %s110_s22 }
  0x17   :  { %v49_v13 = vadd.f32 %v48_v10, %v47_v9  ;;  %v54_v14 = vadd.f32 %v53_v11, %v51_v7  ;;  %v57_v15 = vstv %s111_s23 }
  0x18   :  { %v59_v16 = vstv %s112_s24 }
  0x19   :  { %v56_v17 = vadd.f32 %v55_v12, %v54_v14  ;;  %v58_v18 = vmul.f32 %v57_v15, %v49_v13  ;;  %v62_v20 = vstv %s113_s1 }
  0x1b   :  { %v60_v19 = vmul.f32 %v59_v16, %v56_v17  ;;  %v67_v21 = vrot.slane %v56_v17, 7 }
  0x1d   :  { %v61_v22 = vadd.f32 %v60_v19, %v58_v18  ;;  %v79_v24 = vsel %vm78_vm0, %v49_v13, %v67_v21 }
  0x1f   :  { %v63_v23 = vadd.f32 %v62_v20, %v61_v22 }
  0x21   :  { %v64_v25 = vmax.f32 %v63_v23, 0.0  ;;  %v70_v26 = vrot.slane %v63_v23, 6 }
  0x23   :  { %v65_v27 = vmin.f32 %v64_v25, 6.0  ;;  %v73_v28 = vrot.slane %v64_v25, 5  ;;  %v81_v29 = vsel %vm80_vm1, %v79_v24, %v70_v26 }
  0x25   :  { %v76_v30 = vrot.slane %v65_v27, 4  ;;  %v83_v31 = vsel %vm82_vm2, %v81_v29, %v73_v28 }
  0x27   :  { %v85_v32 = vsel %vm84_vm3, %v83_v31, %v76_v30 }
  0x28   :  { %v87_v33 = vsel %vm86_vm4, %v85_v32, 0.0 }
  0x29   :  { %88 = vst [vmem:[#allocation7] sm:$0xff] %v87_v33 }
  0x2a   :  { %99 = dma.vmem_to_hbm [thread:$0]  %s95_s26, 128, %s97_s29, [#allocation6]  }
  0x2b   :  { %181 = dma.done.wait [#allocation6], 128  }
  0x2c   :  { %182 = vsyncadd [#allocation6], 4294967168 }
  0x2d   :  { %104 = vsyncpa [#allocation5], 1 }
  0x2e   :  { %105 = vsyncpa [#allocation6], 1 }

</bundles_post_ra>
